<compile_context>
chip_gen: v7x
topology: tpu7x:2x2x1
jax: 0.10.0
libtpu: 0.0.40
codegen_flags: <defaults>
</compile_context>

<pallas_src>
import jax
import jax.numpy as jnp
from jax.experimental import pallas as pl
from jax.experimental.pallas import tpu as pltpu


def _build_iwt_kernel(col_splits, row_splits, fold_batch):
    """Kernel factory.

    col_splits / row_splits: number of exact bf16 pieces the column-/row-stage
    data operand is split into before the MXU (1 for bf16 inputs, 3 for f32).
    fold_batch: fold the BK image dim into the matmul M dim for the column
    stage (free reshape when Th is sublane-tile aligned or BK == 1).
    """
    f32, bf16 = jnp.float32, jnp.bfloat16

    def split_bf16(a, n):
        # n residual bf16 pieces whose sum reproduces `a` exactly (n==3 covers
        # a full f32 significand; n==1 is a plain cast).
        if n == 1:
            return [a.astype(bf16)]
        rem = a.astype(f32)
        pieces = []
        for s in range(n):
            p = rem.astype(bf16)
            pieces.append(p)
            if s + 1 < n:
                rem = rem - p.astype(f32)
        return pieces

    def kernel(x_ref, csum_ref, csig_ref, rsum_ref, rsig_ref, o_ref):
        _, bk, th, w = x_ref.shape
        w2 = 2 * w
        csum = csum_ref[...]            # (W, 2W)       bf16, resident
        csig = csig_ref[...]            # (W, 2W)       bf16, resident
        rsum = rsum_ref[...]            # (BK, 2Th, Th) bf16, resident
        rsig = rsig_ref[...]            # (BK, 2Th, Th) bf16, resident

        def col_stage(band, sel):
            data = x_ref[band]          # (BK, Th, W) in input dtype
            if fold_batch:
                # 2-D matmul with batch folded into M: no broadcast, tall M.
                acc = None
                for p in split_bf16(data, col_splits):
                    p2 = p.reshape(bk * th, w)
                    r = jax.lax.dot_general(
                        p2, sel, (((1,), (0,)), ((), ())),
                        preferred_element_type=f32)
                    acc = r if acc is None else acc + r
                return acc.reshape(bk, th, w2)
            # Fallback (Th not tile-aligned): batched matmul with a small
            # in-kernel broadcast of the (W, 2W) matrix.
            sel_b = jnp.broadcast_to(sel, (bk, w, w2))
            acc = None
            for p in split_bf16(data, col_splits):
                r = jax.lax.dot_general(
                    p, sel_b, (((2,), (1,)), ((0,), (0,))),
                    preferred_element_type=f32)
                acc = r if acc is None else acc + r
            return acc

        def row_stage(sel_b, data):
            # sel_b: (BK, 2Th, Th) bf16; data: (BK, Th, 2W) f32 -> (BK, 2Th, 2W) f32
            acc = None
            for p in split_bf16(data, row_splits):
                r = jax.lax.dot_general(
                    sel_b, p, (((2,), (1,)), ((0,), (0,))),
                    preferred_element_type=f32)
                acc = r if acc is None else acc + r
            return acc

        top = col_stage(0, csum) + col_stage(1, csig)   # even output rows' data
        bot = col_stage(2, csum) + col_stage(3, csig)   # odd-row contribution
        out = row_stage(rsum, top) + row_stage(rsig, bot)
        o_ref[...] = out.astype(o_ref.dtype)

    return kernel


def _haar_selection_matrices(w, th, bk):
    """0 / +-0.5 / +-1 selection matrices (exact in bf16), built once on host.

    col_* : (W, 2W)  right-multiply -> input column j lands in output columns
            2j / 2j+1; the global Haar 1/2 and column-parity sign are folded in.
    row_* : (BK, 2Th, Th) left-multiply -> input row i lands in output rows
            2i / 2i+1 with the row-parity sign; pre-broadcast over the image
            block so the kernel does no per-step broadcast work.
    """
    c = jnp.arange(2 * w)[None, :]
    j = jnp.arange(w)[:, None]
    hit_c = (c // 2) == j
    col_sum = jnp.where(hit_c, 0.5, 0.0).astype(jnp.bfloat16)
    col_sig = jnp.where(hit_c, jnp.where(c % 2 == 1, 0.5, -0.5),
                        0.0).astype(jnp.bfloat16)

    r = jnp.arange(2 * th)[:, None]
    i = jnp.arange(th)[None, :]
    hit_r = (r // 2) == i
    row_sum = jnp.where(hit_r, 1.0, 0.0).astype(jnp.bfloat16)
    row_sig = jnp.where(hit_r, jnp.where(r % 2 == 1, 1.0, -1.0),
                        0.0).astype(jnp.bfloat16)
    row_sum_b = jnp.broadcast_to(row_sum, (bk, 2 * th, th))
    row_sig_b = jnp.broadcast_to(row_sig, (bk, 2 * th, th))
    return col_sum, col_sig, row_sum_b, row_sig_b


def _vmem_budget_and_limit():
    """Generation-aware per-step VMEM budget and scoped-VMEM limit."""
    try:
        cap = int(pltpu.get_tpu_info().vmem_capacity_bytes)
    except Exception:
        cap = 64 << 20
    if cap >= (128 << 20):          # v5e / v6e: 128 MiB physical
        return 16 << 20, 64 << 20
    return 8 << 20, 32 << 20        # v7x (64 MiB/core) and unknown: conservative


def _pick_tiles(m, h, w, itemsize, budget):
    """Pick (BK images, Th input rows) per grid step.

    The VMEM model counts everything resident: double-buffered input+output
    blocks, f32/bf16 temporaries, the resident selection matrices (including
    the (BK, 2Th, Th) row matrices) and the column-broadcast fallback.
    Preference: >= 4 total grid steps (>= 2 per v7x TensorCore), then largest
    block volume, then the largest row tile (enables the free batch fold).
    """
    def footprint(bk, th):
        return (16 * bk * th * w * itemsize          # 2x-buffered in + out blocks
                + 72 * bk * th * w                   # f32 temps + bf16 split pieces
                + 16 * w * w                         # col matrices (bf16, 2x-buffered)
                + bk * (16 * th * th + 8 * w * w)    # row matrices + broadcast slack
                + (128 << 10))

    th_cands = sorted({h} | {d for d in range(8, h + 1, 8) if h % d == 0})
    m_divs = [d for d in range(1, m + 1) if m % d == 0]
    best = None
    for th in th_cands:
        for bk in m_divs:
            if footprint(bk, th) > budget:
                continue
            steps = (m // bk) * (h // th)
            cand = (min(steps, 4), bk * th, th, bk)
            if best is None or cand > best:
                best = cand
    if best is None:                 # nothing fits the model: smallest legal tile
        return 1, min(th_cands)
    return best[3], best[2]


def iwt(x):
    """Pallas IWT. x: (B, C, H, W) with B % 4 == 0 -> (B//4, C, 2H, 2W)."""
    B, C, H, W = x.shape
    assert B % 4 == 0, "batch must be a multiple of 4"
    ob = B // 4
    M = ob * C
    itemsize = jnp.dtype(x.dtype).itemsize

    dt = jnp.dtype(x.dtype)
    if dt == jnp.bfloat16:
        splits = 1      # single-pass bf16: exact w.r.t. bf16 inputs
    elif dt == jnp.float16:
        splits = 2      # two bf16 pieces cover fp16's 11-bit significand
    else:
        splits = 3      # exact f32 path (HIGH-equivalent cost, no HIGHEST)

    budget, vmem_limit = _vmem_budget_and_limit()
    BK, Th = _pick_tiles(M, H, W, itemsize, budget)
    # Free reshape for both f32 (8-row) and bf16 (16-row) sublane tiling.
    fold_batch = (BK == 1) or (Th % 16 == 0)

    # (4*ob, C, H, W) -> (4, ob*C, H, W): subbands leading; leading-dim-only
    # reshape, so it is layout-free (no HBM pass).
    xr = x.reshape(4, M, H, W)
    col_sum, col_sig, row_sum_b, row_sig_b = _haar_selection_matrices(W, Th, BK)

    kernel = _build_iwt_kernel(splits, splits, fold_batch)
    grid = (M // BK, H // Th)

    out = pl.pallas_call(
        kernel,
        out_shape=jax.ShapeDtypeStruct((M, 2 * H, 2 * W), x.dtype),
        grid_spec=pltpu.PrefetchScalarGridSpec(
            num_scalar_prefetch=0,
            grid=grid,
            in_specs=[
                pl.BlockSpec((4, BK, Th, W), lambda i, r: (0, i, r, 0)),
                # Selection matrices: constant index_map -> DMA'd once, then
                # VMEM-resident across all grid steps.
                pl.BlockSpec((W, 2 * W), lambda i, r: (0, 0)),
                pl.BlockSpec((W, 2 * W), lambda i, r: (0, 0)),
                pl.BlockSpec((BK, 2 * Th, Th), lambda i, r: (0, 0, 0)),
                pl.BlockSpec((BK, 2 * Th, Th), lambda i, r: (0, 0, 0)),
            ],
            out_specs=pl.BlockSpec((BK, 2 * Th, 2 * W), lambda i, r: (i, r, 0)),
        ),
        compiler_params=pltpu.CompilerParams(
            dimension_semantics=("parallel", "parallel"),
            vmem_limit_bytes=vmem_limit,
        ),
    )(xr, col_sum, col_sig, row_sum_b, row_sig_b)

    # Leading-dim split only (free): (ob*C, 2H, 2W) -> (ob, C, 2H, 2W).
    return out.reshape(ob, C, 2 * H, 2 * W)


def iwt_ref(x):
    """Pure-JAX reference mirroring the PyTorch iwt_init."""
    B, C, H, W = x.shape
    ob = B // 4
    x1 = x[0 * ob:1 * ob] / 2
    x2 = x[1 * ob:2 * ob] / 2
    x3 = x[2 * ob:3 * ob] / 2
    x4 = x[3 * ob:4 * ob] / 2
    h = jnp.zeros((ob, C, 2 * H, 2 * W), x.dtype)
    h = h.at[:, :, 0::2, 0::2].set(x1 - x2 - x3 + x4)
    h = h.at[:, :, 1::2, 0::2].set(x1 - x2 + x3 - x4)
    h = h.at[:, :, 0::2, 1::2].set(x1 + x2 - x3 - x4)
    h = h.at[:, :, 1::2, 1::2].set(x1 + x2 + x3 + x4)
    return h


if __name__ == "__main__":
    key = jax.random.PRNGKey(0)
    # B=8 (=> out_batch=2), C=4, H=W=16  ->  output (2, 4, 32, 32)
    x = jax.random.normal(key, (8, 4, 16, 16), dtype=jnp.float32)

    out = jax.block_until_ready(jax.jit(iwt)(x))

    ref = iwt_ref(x)
    assert out.shape == (2, 4, 32, 32)
    assert jnp.allclose(out, ref, atol=1e-5, rtol=1e-5)

    print("KERNEL_OK")
</pallas_src>

<mosaic_0001>
module attributes {stable_mosaic.version = 11 : i64} {
  func.func @kernel(%arg0: i32, %arg1: i32, %arg2: memref<4x2x16x16xf32, #tpu.memory_space<vmem>>, %arg3: memref<16x32xbf16, #tpu.memory_space<vmem>>, %arg4: memref<16x32xbf16, #tpu.memory_space<vmem>>, %arg5: memref<2x32x16xbf16, #tpu.memory_space<vmem>>, %arg6: memref<2x32x16xbf16, #tpu.memory_space<vmem>>, %arg7: memref<2x32x32xf32, #tpu.memory_space<vmem>>) attributes {dimension_semantics = [#tpu.dimension_semantics<parallel>, #tpu.dimension_semantics<parallel>], iteration_bounds = array<i64: 4, 1>, scalar_prefetch = 0 : i64, scratch_operands = 0 : i64, tpu.core_type = #tpu.core_type<tc>, window_params = [{transform_indices = @transform_0, window_bounds = array<i64: 4, 2, 16, 16>}, {pipeline_mode = #tpu.pipeline_mode<synchronous>, transform_indices = @transform_1, window_bounds = array<i64: 16, 32>}, {pipeline_mode = #tpu.pipeline_mode<synchronous>, transform_indices = @transform_2, window_bounds = array<i64: 16, 32>}, {pipeline_mode = #tpu.pipeline_mode<synchronous>, transform_indices = @transform_3, window_bounds = array<i64: 2, 32, 16>}, {pipeline_mode = #tpu.pipeline_mode<synchronous>, transform_indices = @transform_4, window_bounds = array<i64: 2, 32, 16>}, {transform_indices = @transform_5, window_bounds = array<i64: 2, 32, 32>}]} {
    %c0 = arith.constant 0 : index
    %c0_0 = arith.constant 0 : index
    %0 = vector.load %arg3[%c0, %c0_0] : memref<16x32xbf16, #tpu.memory_space<vmem>>, vector<16x32xbf16>
    %c0_1 = arith.constant 0 : index
    %c0_2 = arith.constant 0 : index
    %1 = vector.load %arg4[%c0_1, %c0_2] : memref<16x32xbf16, #tpu.memory_space<vmem>>, vector<16x32xbf16>
    %c0_3 = arith.constant 0 : index
    %c0_4 = arith.constant 0 : index
    %c0_5 = arith.constant 0 : index
    %2 = vector.load %arg5[%c0_3, %c0_4, %c0_5] : memref<2x32x16xbf16, #tpu.memory_space<vmem>>, vector<2x32x16xbf16>
    %c0_6 = arith.constant 0 : index
    %c0_7 = arith.constant 0 : index
    %c0_8 = arith.constant 0 : index
    %3 = vector.load %arg6[%c0_6, %c0_7, %c0_8] : memref<2x32x16xbf16, #tpu.memory_space<vmem>>, vector<2x32x16xbf16>
    %c0_9 = arith.constant 0 : index
    %c0_10 = arith.constant 0 : index
    %c0_11 = arith.constant 0 : index
    %c0_12 = arith.constant 0 : index
    %4 = vector.load %arg2[%c0_9, %c0_10, %c0_11, %c0_12] : memref<4x2x16x16xf32, #tpu.memory_space<vmem>>, vector<1x2x16x16xf32>
    %5 = vector.shape_cast %4 : vector<1x2x16x16xf32> to vector<2x16x16xf32>
    %6 = arith.truncf %5 : vector<2x16x16xf32> to vector<2x16x16xbf16>
    %7 = arith.extf %6 : vector<2x16x16xbf16> to vector<2x16x16xf32>
    %8 = arith.subf %5, %7 : vector<2x16x16xf32>
    %9 = arith.truncf %8 : vector<2x16x16xf32> to vector<2x16x16xbf16>
    %10 = arith.extf %9 : vector<2x16x16xbf16> to vector<2x16x16xf32>
    %11 = arith.subf %8, %10 : vector<2x16x16xf32>
    %12 = arith.truncf %11 : vector<2x16x16xf32> to vector<2x16x16xbf16>
    %13 = vector.shape_cast %6 : vector<2x16x16xbf16> to vector<32x16xbf16>
    %cst = arith.constant dense<0.000000e+00> : vector<32x32xf32>
    %14 = tpu.matmul %13, %0, %cst {dimension_numbers = #tpu.dot_dimension_numbers<[1], [0], [0], [1], [0, 0, 1, 1], [], []>} : vector<32x16xbf16>, vector<16x32xbf16>, vector<32x32xf32> -> vector<32x32xf32>
    %15 = vector.shape_cast %9 : vector<2x16x16xbf16> to vector<32x16xbf16>
    %cst_13 = arith.constant dense<0.000000e+00> : vector<32x32xf32>
    %16 = tpu.matmul %15, %0, %cst_13 {dimension_numbers = #tpu.dot_dimension_numbers<[1], [0], [0], [1], [0, 0, 1, 1], [], []>} : vector<32x16xbf16>, vector<16x32xbf16>, vector<32x32xf32> -> vector<32x32xf32>
    %17 = arith.addf %14, %16 : vector<32x32xf32>
    %18 = vector.shape_cast %12 : vector<2x16x16xbf16> to vector<32x16xbf16>
    %cst_14 = arith.constant dense<0.000000e+00> : vector<32x32xf32>
    %19 = tpu.matmul %18, %0, %cst_14 {dimension_numbers = #tpu.dot_dimension_numbers<[1], [0], [0], [1], [0, 0, 1, 1], [], []>} : vector<32x16xbf16>, vector<16x32xbf16>, vector<32x32xf32> -> vector<32x32xf32>
    %20 = arith.addf %17, %19 : vector<32x32xf32>
    %21 = vector.shape_cast %20 : vector<32x32xf32> to vector<2x16x32xf32>
    %c1 = arith.constant 1 : index
    %c0_15 = arith.constant 0 : index
    %c0_16 = arith.constant 0 : index
    %c0_17 = arith.constant 0 : index
    %22 = vector.load %arg2[%c1, %c0_15, %c0_16, %c0_17] : memref<4x2x16x16xf32, #tpu.memory_space<vmem>>, vector<1x2x16x16xf32>
    %23 = vector.shape_cast %22 : vector<1x2x16x16xf32> to vector<2x16x16xf32>
    %24 = arith.truncf %23 : vector<2x16x16xf32> to vector<2x16x16xbf16>
    %25 = arith.extf %24 : vector<2x16x16xbf16> to vector<2x16x16xf32>
    %26 = arith.subf %23, %25 : vector<2x16x16xf32>
    %27 = arith.truncf %26 : vector<2x16x16xf32> to vector<2x16x16xbf16>
    %28 = arith.extf %27 : vector<2x16x16xbf16> to vector<2x16x16xf32>
    %29 = arith.subf %26, %28 : vector<2x16x16xf32>
    %30 = arith.truncf %29 : vector<2x16x16xf32> to vector<2x16x16xbf16>
    %31 = vector.shape_cast %24 : vector<2x16x16xbf16> to vector<32x16xbf16>
    %cst_18 = arith.constant dense<0.000000e+00> : vector<32x32xf32>
    %32 = tpu.matmul %31, %1, %cst_18 {dimension_numbers = #tpu.dot_dimension_numbers<[1], [0], [0], [1], [0, 0, 1, 1], [], []>} : vector<32x16xbf16>, vector<16x32xbf16>, vector<32x32xf32> -> vector<32x32xf32>
    %33 = vector.shape_cast %27 : vector<2x16x16xbf16> to vector<32x16xbf16>
    %cst_19 = arith.constant dense<0.000000e+00> : vector<32x32xf32>
    %34 = tpu.matmul %33, %1, %cst_19 {dimension_numbers = #tpu.dot_dimension_numbers<[1], [0], [0], [1], [0, 0, 1, 1], [], []>} : vector<32x16xbf16>, vector<16x32xbf16>, vector<32x32xf32> -> vector<32x32xf32>
    %35 = arith.addf %32, %34 : vector<32x32xf32>
    %36 = vector.shape_cast %30 : vector<2x16x16xbf16> to vector<32x16xbf16>
    %cst_20 = arith.constant dense<0.000000e+00> : vector<32x32xf32>
    %37 = tpu.matmul %36, %1, %cst_20 {dimension_numbers = #tpu.dot_dimension_numbers<[1], [0], [0], [1], [0, 0, 1, 1], [], []>} : vector<32x16xbf16>, vector<16x32xbf16>, vector<32x32xf32> -> vector<32x32xf32>
    %38 = arith.addf %35, %37 : vector<32x32xf32>
    %39 = vector.shape_cast %38 : vector<32x32xf32> to vector<2x16x32xf32>
    %40 = arith.addf %21, %39 : vector<2x16x32xf32>
    %c2 = arith.constant 2 : index
    %c0_21 = arith.constant 0 : index
    %c0_22 = arith.constant 0 : index
    %c0_23 = arith.constant 0 : index
    %41 = vector.load %arg2[%c2, %c0_21, %c0_22, %c0_23] : memref<4x2x16x16xf32, #tpu.memory_space<vmem>>, vector<1x2x16x16xf32>
    %42 = vector.shape_cast %41 : vector<1x2x16x16xf32> to vector<2x16x16xf32>
    %43 = arith.truncf %42 : vector<2x16x16xf32> to vector<2x16x16xbf16>
    %44 = arith.extf %43 : vector<2x16x16xbf16> to vector<2x16x16xf32>
    %45 = arith.subf %42, %44 : vector<2x16x16xf32>
    %46 = arith.truncf %45 : vector<2x16x16xf32> to vector<2x16x16xbf16>
    %47 = arith.extf %46 : vector<2x16x16xbf16> to vector<2x16x16xf32>
    %48 = arith.subf %45, %47 : vector<2x16x16xf32>
    %49 = arith.truncf %48 : vector<2x16x16xf32> to vector<2x16x16xbf16>
    %50 = vector.shape_cast %43 : vector<2x16x16xbf16> to vector<32x16xbf16>
    %cst_24 = arith.constant dense<0.000000e+00> : vector<32x32xf32>
    %51 = tpu.matmul %50, %0, %cst_24 {dimension_numbers = #tpu.dot_dimension_numbers<[1], [0], [0], [1], [0, 0, 1, 1], [], []>} : vector<32x16xbf16>, vector<16x32xbf16>, vector<32x32xf32> -> vector<32x32xf32>
    %52 = vector.shape_cast %46 : vector<2x16x16xbf16> to vector<32x16xbf16>
    %cst_25 = arith.constant dense<0.000000e+00> : vector<32x32xf32>
    %53 = tpu.matmul %52, %0, %cst_25 {dimension_numbers = #tpu.dot_dimension_numbers<[1], [0], [0], [1], [0, 0, 1, 1], [], []>} : vector<32x16xbf16>, vector<16x32xbf16>, vector<32x32xf32> -> vector<32x32xf32>
    %54 = arith.addf %51, %53 : vector<32x32xf32>
    %55 = vector.shape_cast %49 : vector<2x16x16xbf16> to vector<32x16xbf16>
    %cst_26 = arith.constant dense<0.000000e+00> : vector<32x32xf32>
    %56 = tpu.matmul %55, %0, %cst_26 {dimension_numbers = #tpu.dot_dimension_numbers<[1], [0], [0], [1], [0, 0, 1, 1], [], []>} : vector<32x16xbf16>, vector<16x32xbf16>, vector<32x32xf32> -> vector<32x32xf32>
    %57 = arith.addf %54, %56 : vector<32x32xf32>
    %58 = vector.shape_cast %57 : vector<32x32xf32> to vector<2x16x32xf32>
    %c3 = arith.constant 3 : index
    %c0_27 = arith.constant 0 : index
    %c0_28 = arith.constant 0 : index
    %c0_29 = arith.constant 0 : index
    %59 = vector.load %arg2[%c3, %c0_27, %c0_28, %c0_29] : memref<4x2x16x16xf32, #tpu.memory_space<vmem>>, vector<1x2x16x16xf32>
    %60 = vector.shape_cast %59 : vector<1x2x16x16xf32> to vector<2x16x16xf32>
    %61 = arith.truncf %60 : vector<2x16x16xf32> to vector<2x16x16xbf16>
    %62 = arith.extf %61 : vector<2x16x16xbf16> to vector<2x16x16xf32>
    %63 = arith.subf %60, %62 : vector<2x16x16xf32>
    %64 = arith.truncf %63 : vector<2x16x16xf32> to vector<2x16x16xbf16>
    %65 = arith.extf %64 : vector<2x16x16xbf16> to vector<2x16x16xf32>
    %66 = arith.subf %63, %65 : vector<2x16x16xf32>
    %67 = arith.truncf %66 : vector<2x16x16xf32> to vector<2x16x16xbf16>
    %68 = vector.shape_cast %61 : vector<2x16x16xbf16> to vector<32x16xbf16>
    %cst_30 = arith.constant dense<0.000000e+00> : vector<32x32xf32>
    %69 = tpu.matmul %68, %1, %cst_30 {dimension_numbers = #tpu.dot_dimension_numbers<[1], [0], [0], [1], [0, 0, 1, 1], [], []>} : vector<32x16xbf16>, vector<16x32xbf16>, vector<32x32xf32> -> vector<32x32xf32>
    %70 = vector.shape_cast %64 : vector<2x16x16xbf16> to vector<32x16xbf16>
    %cst_31 = arith.constant dense<0.000000e+00> : vector<32x32xf32>
    %71 = tpu.matmul %70, %1, %cst_31 {dimension_numbers = #tpu.dot_dimension_numbers<[1], [0], [0], [1], [0, 0, 1, 1], [], []>} : vector<32x16xbf16>, vector<16x32xbf16>, vector<32x32xf32> -> vector<32x32xf32>
    %72 = arith.addf %69, %71 : vector<32x32xf32>
    %73 = vector.shape_cast %67 : vector<2x16x16xbf16> to vector<32x16xbf16>
    %cst_32 = arith.constant dense<0.000000e+00> : vector<32x32xf32>
    %74 = tpu.matmul %73, %1, %cst_32 {dimension_numbers = #tpu.dot_dimension_numbers<[1], [0], [0], [1], [0, 0, 1, 1], [], []>} : vector<32x16xbf16>, vector<16x32xbf16>, vector<32x32xf32> -> vector<32x32xf32>
    %75 = arith.addf %72, %74 : vector<32x32xf32>
    %76 = vector.shape_cast %75 : vector<32x32xf32> to vector<2x16x32xf32>
    %77 = arith.addf %58, %76 : vector<2x16x32xf32>
    %78 = arith.truncf %40 : vector<2x16x32xf32> to vector<2x16x32xbf16>
    %79 = arith.extf %78 : vector<2x16x32xbf16> to vector<2x16x32xf32>
    %80 = arith.subf %40, %79 : vector<2x16x32xf32>
    %81 = arith.truncf %80 : vector<2x16x32xf32> to vector<2x16x32xbf16>
    %82 = arith.extf %81 : vector<2x16x32xbf16> to vector<2x16x32xf32>
    %83 = arith.subf %80, %82 : vector<2x16x32xf32>
    %84 = arith.truncf %83 : vector<2x16x32xf32> to vector<2x16x32xbf16>
    %cst_33 = arith.constant dense<0.000000e+00> : vector<2x32x32xf32>
    %85 = tpu.matmul %2, %78, %cst_33 {dimension_numbers = #tpu.dot_dimension_numbers<[2], [1], [1], [2], [0, 0, 0, 1, 1, 2], [0], [0]>} : vector<2x32x16xbf16>, vector<2x16x32xbf16>, vector<2x32x32xf32> -> vector<2x32x32xf32>
    %cst_34 = arith.constant dense<0.000000e+00> : vector<2x32x32xf32>
    %86 = tpu.matmul %2, %81, %cst_34 {dimension_numbers = #tpu.dot_dimension_numbers<[2], [1], [1], [2], [0, 0, 0, 1, 1, 2], [0], [0]>} : vector<2x32x16xbf16>, vector<2x16x32xbf16>, vector<2x32x32xf32> -> vector<2x32x32xf32>
    %87 = arith.addf %85, %86 : vector<2x32x32xf32>
    %cst_35 = arith.constant dense<0.000000e+00> : vector<2x32x32xf32>
    %88 = tpu.matmul %2, %84, %cst_35 {dimension_numbers = #tpu.dot_dimension_numbers<[2], [1], [1], [2], [0, 0, 0, 1, 1, 2], [0], [0]>} : vector<2x32x16xbf16>, vector<2x16x32xbf16>, vector<2x32x32xf32> -> vector<2x32x32xf32>
    %89 = arith.addf %87, %88 : vector<2x32x32xf32>
    %90 = arith.truncf %77 : vector<2x16x32xf32> to vector<2x16x32xbf16>
    %91 = arith.extf %90 : vector<2x16x32xbf16> to vector<2x16x32xf32>
    %92 = arith.subf %77, %91 : vector<2x16x32xf32>
    %93 = arith.truncf %92 : vector<2x16x32xf32> to vector<2x16x32xbf16>
    %94 = arith.extf %93 : vector<2x16x32xbf16> to vector<2x16x32xf32>
    %95 = arith.subf %92, %94 : vector<2x16x32xf32>
    %96 = arith.truncf %95 : vector<2x16x32xf32> to vector<2x16x32xbf16>
    %cst_36 = arith.constant dense<0.000000e+00> : vector<2x32x32xf32>
    %97 = tpu.matmul %3, %90, %cst_36 {dimension_numbers = #tpu.dot_dimension_numbers<[2], [1], [1], [2], [0, 0, 0, 1, 1, 2], [0], [0]>} : vector<2x32x16xbf16>, vector<2x16x32xbf16>, vector<2x32x32xf32> -> vector<2x32x32xf32>
    %cst_37 = arith.constant dense<0.000000e+00> : vector<2x32x32xf32>
    %98 = tpu.matmul %3, %93, %cst_37 {dimension_numbers = #tpu.dot_dimension_numbers<[2], [1], [1], [2], [0, 0, 0, 1, 1, 2], [0], [0]>} : vector<2x32x16xbf16>, vector<2x16x32xbf16>, vector<2x32x32xf32> -> vector<2x32x32xf32>
    %99 = arith.addf %97, %98 : vector<2x32x32xf32>
    %cst_38 = arith.constant dense<0.000000e+00> : vector<2x32x32xf32>
    %100 = tpu.matmul %3, %96, %cst_38 {dimension_numbers = #tpu.dot_dimension_numbers<[2], [1], [1], [2], [0, 0, 0, 1, 1, 2], [0], [0]>} : vector<2x32x16xbf16>, vector<2x16x32xbf16>, vector<2x32x32xf32> -> vector<2x32x32xf32>
    %101 = arith.addf %99, %100 : vector<2x32x32xf32>
    %102 = arith.addf %89, %101 : vector<2x32x32xf32>
    %c0_39 = arith.constant 0 : index
    %c0_40 = arith.constant 0 : index
    %c0_41 = arith.constant 0 : index
    %103 = vector.load %arg7[%c0_39, %c0_40, %c0_41] : memref<2x32x32xf32, #tpu.memory_space<vmem>>, vector<2x32x32xf32>
    tpu.vector_store %arg7[%c0_39, %c0_40, %c0_41], %102 {strides = array<i32>} : memref<2x32x32xf32, #tpu.memory_space<vmem>>, vector<2x32x32xf32>,
    return
  }
  func.func @transform_0(%arg0: i32, %arg1: i32) -> (i32, i32, i32, i32) {
    %c0_i32 = arith.constant 0 : i32
    %c0_i32_0 = arith.constant 0 : i32
    %c0_i32_1 = arith.constant 0 : i32
    return %c0_i32, %arg0, %arg1, %c0_i32_0 : i32, i32, i32, i32
  }
  func.func @transform_1(%arg0: i32, %arg1: i32) -> (i32, i32) {
    %c0_i32 = arith.constant 0 : i32
    %c0_i32_0 = arith.constant 0 : i32
    %c0_i32_1 = arith.constant 0 : i32
    return %c0_i32, %c0_i32_0 : i32, i32
  }
  func.func @transform_2(%arg0: i32, %arg1: i32) -> (i32, i32) {
    %c0_i32 = arith.constant 0 : i32
    %c0_i32_0 = arith.constant 0 : i32
    %c0_i32_1 = arith.constant 0 : i32
    return %c0_i32, %c0_i32_0 : i32, i32
  }
  func.func @transform_3(%arg0: i32, %arg1: i32) -> (i32, i32, i32) {
    %c0_i32 = arith.constant 0 : i32
    %c0_i32_0 = arith.constant 0 : i32
    %c0_i32_1 = arith.constant 0 : i32
    %c0_i32_2 = arith.constant 0 : i32
    return %c0_i32, %c0_i32_0, %c0_i32_1 : i32, i32, i32
  }
  func.func @transform_4(%arg0: i32, %arg1: i32) -> (i32, i32, i32) {
    %c0_i32 = arith.constant 0 : i32
    %c0_i32_0 = arith.constant 0 : i32
    %c0_i32_1 = arith.constant 0 : i32
    %c0_i32_2 = arith.constant 0 : i32
    return %c0_i32, %c0_i32_0, %c0_i32_1 : i32, i32, i32
  }
  func.func @transform_5(%arg0: i32, %arg1: i32) -> (i32, i32, i32) {
    %c0_i32 = arith.constant 0 : i32
    %c0_i32_0 = arith.constant 0 : i32
    return %arg0, %arg1, %c0_i32 : i32, i32, i32
  }
}

</mosaic_0001>

<bundles_post_ra>
// kernel: iwt.1
= control target key start
LH: loop header
LB: loop body
LE: loop exit
PB: predicated region body
PF: predicated region fallthrough
CT: control target
= control target key end

     0   :  { %10 = vsyncpa [#allocation3], 0  ;;  %s2847_s0 = inlined_call_operand.hbm [shape: f32[4,8,16,16], index: 0, kind: input, shape index: {}]   ;;  %s2848_s1 = inlined_call_operand.vmem [shape: bf16[16,32], index: 1, kind: input, shape index: {}]   ;;  %s2849_s2 = inlined_call_operand.vmem [shape: bf16[16,32], index: 2, kind: input, shape index: {}]   ;;  %s2850_s3 = inlined_call_operand.vmem [shape: bf16[2,32,16], index: 3, kind: input, shape index: {}]   ;;  %s2851_s4 = inlined_call_operand.vmem [shape: bf16[2,32,16], index: 4, kind: input, shape index: {}]   ;;  %s2852_s5 = inlined_call_operand.hbm [shape: f32[8,32,32], index: 5, kind: output, shape index: {}]  }
   0x1   :  { %12 = vsyncpa [#allocation3 + $0x1], 0 }
   0x2   :  { %13 = vsyncpa [#allocation4], 0 }
   0x3   :  { %15 = vsyncpa [#allocation4 + $0x1], 0  ;;  %s2543_s18 = smov 0   ;;  %s2545_s19 = smov 0  }
   0x4   :  { %s2547_s20 = smov 0   ;;  %s2549_s21 = smov 0  }
   0x5   :  { %s2551_s22 = smov 0   ;;  %s2553_s23 = smov 0  }
   0x6 LB: > { %s1949_s24 = sadd.s32 4294967295, %s2502_s23   ;;  %s1950_s25 = sadd.s32 4294967294, %s2502_s23   ;;  %s2502_s23 = sphi %s2553_s23, %s21_s23   ;;  %s2498_s22 = sphi %s2551_s22, %s2864_s22   ;;  %s2494_s21 = sphi %s2549_s21, %s2863_s21   ;;  %s2490_s20 = sphi %s2547_s20, %s2862_s20   ;;  %s2486_s19 = sphi %s2545_s19, %s2861_s19   ;;  %s2482_s18 = sphi %s2543_s18, %s2860_s18  }
   0x7   : > { %s33_s26 = sadd.s32 1, %s2498_s22  ;;  %s42_s27 = sadd.s32 1, %s2490_s20 }
   0x8   : > { %p35_p0 = scmp.ge.s32.totalorder %s33_s26, 4  ;;  %p49_p1 = scmp.ne.s32.totalorder %s2490_s20, %s2486_s19 }
   0x9   : > { %p50_p2 = scmp.eq.s32.totalorder %s2502_s23, 0  ;;  %p55_p3 = scmp.ne.s32.totalorder %s2486_s19, %s2482_s18 }
   0xa   : > { %s2866_s26 = smov (%p35_p0, %s33_s26), 0  ;;  %p56_p5 = scmp.eq.s32.totalorder %s1949_s24, 0 }
   0xb   : > { %2854 = sst [smem:[#allocation11_spill]] %s2866_s26  ;;  %p2584_p4 = por %p50_p2, %p49_p1 }
   0xc   : > { %s37_s29 = ssub.s32 %s2498_s22, %s2866_s26  ;;  %p165_p6 = scmp.eq.s32.totalorder %s1949_s24, 3 }
   0xd   : > { %p40_p7 = scmp.eq.s32.totalorder %s37_s29, 0  ;;  %p2590_p8 = por %p56_p5, %p55_p3 }
   0xe   : > { %p2594_p9 = por %p165_p6, %p49_p1  ;;  %p171_p10 = scmp.eq.s32.totalorder %s1950_s25, 3 }
   0xf   : > { %s2599_s7 = scalar_select %p40_p7, %s2490_s20, %s42_s27  }
  0x10   : > { %p2601_p11 = por %p171_p10, %p55_p3  ;;  %p1952_p12 = scmp.ge.s32.totalorder %s2502_s23, 4 }
  0x12   : > { %199 = sbr.rel (%p1952_p12) target bundleno = 38 (0x26), region = 32 }
  0x19   : > { %s203_s9 = sand.u32 1, %s2490_s20   ;;  %s2039_s10 = sshll.u32 %s2498_s22, 9 }
  0x1a   : > { %s1953_s11 = sshll.u32 %s203_s9, 7  ;;  %s216_s14 = scalar_lea.hbm %s2847_s0, %s2039_s10 }
  0x1b   : > { %s2338_s15 = scalar_select %p2584_p4, [#allocation0], [#allocation8] }
  0x1c   : > { %s207_s16 = scalar_lea.vmem [#allocation2], %s1953_s11  ;;  %s2504_s25 = smov 2048  }
  0x1d   : > { %s229_s17 = sshll.u32 %s207_s16, 4  ;;  %s221_s24 = sld [smem:[%s2338_s15]]   ;;  %s230_s17 = int_to_ptr.vmem [resolvable:$true] %s229_s17 }
  0x1e   : > { %2339 = sst [smem:[#allocation7]] (%p2584_p4), %s2504_s25  ;;  %s2505_s27 = smov 512  }
  0x1f   : > { %2340 = sst [smem:[#allocation7 + $0x1]] (%p2584_p4), %s2505_s27  ;;  %s2506_s29 = smov 4  }
  0x20   : > { %2341 = sst [smem:[#allocation7 + $0x2]] (%p2584_p4), %s2506_s29  ;;  %s2507_s26 = smov 128  }
  0x21   : > { %2342 = sst [smem:[#allocation7 + $0x3]] (%p2584_p4), %s2507_s26  ;;  %s2508_s11 = smov 8  }
  0x22   : > { %2343 = sst [smem:[#allocation7 + $0x4]] (%p2584_p4), %s2507_s26  ;;  %s204_s13 = scalar_lea.sflag [#allocation3], %s203_s9 }
  0x23   : > { %s1957_s10 = sshll.u32 %s221_s24, 26  ;;  %2344 = sst [smem:[#allocation7 + $0x5]] (%p2584_p4), %s2508_s11 }
  0x24   : > { %s1958_s12 = sadd.s32 134217728, %s1957_s10  ;;  %s2509_s15 = smov [#allocation6]  }
  0x25   : > { %2345 = dma.general (%p2584_p4), %s216_s14, 2048, %s230_s17, %s204_s13, %s2509_s15, [#allocation7], %s1958_s12, 0  }
  0x26 PF: > { %p1959_p13 = scmp.ge.s32.totalorder %s2502_s23, 1  ;;  %p250_p0 = scmp.lt.s32.totalorder %s2502_s23, 5 }
  0x28   : > { %p251_p1 = pnand %p1959_p13, %p250_p0 }
  0x29   : > { %s2630_s16 = sand.u32 (!%p251_p1), 1, %s2486_s19  }
  0x2a   : > { %254 = sbr.rel (%p251_p1) target bundleno = 638 (0x27e), region = 40  ;;  %s1960_s26 = sshll.u32 (!%p251_p1), %s2630_s16, 7 }
  0x2b   : > { %s257_s24 = scalar_lea.sflag (!%p251_p1), [#allocation3], %s2630_s16  ;;  %s2634_s25 = scalar_lea.vmem (!%p251_p1), [#allocation2], %s1960_s26 }
  0x31   : > { %2473 = dma.done.wait (%p2590_p8), %s257_s24, 2048  }
  0x32   : > { %2475 = vsyncadd (%p2590_p8), %s257_s24, 4294965248  ;;  %v2643_v0 = vld [vmem:[%s2848_s1] sm:$0xff]   ;;  %v313_v2 = vld [vmem:[%s2634_s25 + $0x8] sm:$0xff]  ;;  %vm344_vm0 = vcmask 130048   ;;  %s1961_s27 = sshll.u32 %s2630_s16, 6  ;;  %vm1836_vm1 = vcmask 261120  }
  0x33   : > { %v312_v1 = vld [vmem:[%s2634_s25] sm:$0xff]  ;;  %2114 = vmatprep.subr.bf16.mxu0 %v2643_v0  ;;  %2150 = vmatprep.subr.bf16.mxu1 %v2643_v0  ;;  %v1981_v5 = vld [vmem:[%s2634_s25 + $0x48] sm:$0xff]  ;;  %v314_v6 = vld [vmem:[%s2634_s25 + $0x10] sm:$0xff]  ;;  %s286_s29 = scalar_lea.vmem [#allocation5], %s1961_s27  ;;  %s2041_s11 = sshll.u32 %s2494_s21, 10 }
  0x34   : > { %v1980_v3 = vld [vmem:[%s2634_s25 + $0x40] sm:$0xff]  ;;  %v316_v4 = vpack.c.bf16 %v313_v2, %v312_v1  ;;  %v315_v7 = vld [vmem:[%s2634_s25 + $0x18] sm:$0xff]  ;;  %2115 = vmatpush3.bf16.msra.mxu0 %v2643_v0  ;;  %2151 = vmatpush3.bf16.msra.mxu1 %v2643_v0  ;;  %v1982_v10 = vld [vmem:[%s2634_s25 + $0x50] sm:$0xff]  ;;  %s1862_s10 = sshll.u32 %s286_s29, 4  ;;  %s2794_s21 = scalar_lea.hbm %s2852_s5, %s2041_s11  ;;  %s2787_s10 = int_to_ptr.vmem [resolvable:$true] %s1862_s10 }
  0x35   : > { %v725_v8 = vpack.c.bf16 %v1981_v5, %v1980_v3  ;;  %v317_v9 = vpack.c.bf16 %v315_v7, %v314_v6  ;;  %v1983_v11 = vld [vmem:[%s2634_s25 + $0x58] sm:$0xff]  ;;  %2120 = vmatprep.subr.bf16.mxu0 %v2643_v0  ;;  %2156 = vmatprep.subr.bf16.mxu1 %v2643_v0  ;;  %v1969_v41 = vld [vmem:[%s2634_s25 + $0x20] sm:$0xff]  ;;  %v1970_v42 = vld [vmem:[%s2634_s25 + $0x28] sm:$0xff]  ;;  %s1846_s15 = scalar_lea.sflag [#allocation4], %s2630_s16  ;;  %s2420_s26 = scalar_lea.vmem %s2787_s10, 1024 }
  0x36   : > { %v318_v12 = vunpack.c.l.bf16 %v316_v4  ;;  %v319_v13 = vunpack.c.h.bf16 %v316_v4  ;;  %v726_v14 = vpack.c.bf16 %v1983_v11, %v1982_v10  ;;  %v1990_v43 = vld [vmem:[%s2634_s25 + $0x60] sm:$0xff]  ;;  %v1991_v44 = vld [vmem:[%s2634_s25 + $0x68] sm:$0xff]  ;;  %v519_v46 = vpack.c.bf16 %v1970_v42, %v1969_v41  ;;  %v1971_v62 = vld [vmem:[%s2634_s25 + $0x30] sm:$0xff]  ;;  %p2421_p2 = scmp.ne.s32.totalorder %s2787_s10, %s2420_s26  ;;  %s2510_s24 = smov [#allocation5]  }
  0x37   : > { %v727_v15 = vunpack.c.l.bf16 %v725_v8  ;;  %v728_v16 = vunpack.c.h.bf16 %v725_v8  ;;  %v320_v17 = vunpack.c.l.bf16 %v317_v9  ;;  %v321_v18 = vunpack.c.h.bf16 %v317_v9  ;;  %v2676_v48 = vld [vmem:[%s2849_s2] sm:$0xff]   ;;  %v1972_v63 = vld [vmem:[%s2634_s25 + $0x38] sm:$0xff] }
  0x38   : > { %v322_v19 = vsub.f32 %v312_v1, %v318_v12  ;;  %v323_v20 = vsub.f32 %v313_v2, %v319_v13  ;;  %v729_v21 = vunpack.c.l.bf16 %v726_v14  ;;  %v730_v22 = vunpack.c.h.bf16 %v726_v14  ;;  %v1992_v2 = vld [vmem:[%s2634_s25 + $0x70] sm:$0xff]  ;;  %p2422_p3 = pnand %p2421_p2, %p2594_p9 }
  0x39   : > { %v731_v23 = vsub.f32 %v1980_v3, %v727_v15  ;;  %v732_v24 = vsub.f32 %v1981_v5, %v728_v16  ;;  %v324_v25 = vsub.f32 %v314_v6, %v320_v17  ;;  %v325_v26 = vsub.f32 %v315_v7, %v321_v18  ;;  %v1993_v3 = vld [vmem:[%s2634_s25 + $0x78] sm:$0xff]  ;;  %s2424_s25 = sshll.u32 %s2510_s24, 4  ;;  %s2425_s25 = int_to_ptr.vmem [resolvable:$false] %s2424_s25 }
  0x3a   : > { %v326_v27 = vpack.c.bf16 %v323_v20, %v322_v19  ;;  %v733_v28 = vsub.f32 %v1982_v10, %v729_v21  ;;  %v734_v29 = vsub.f32 %v1983_v11, %v730_v22  ;;  %v921_v49 = vpack.c.bf16 %v1991_v44, %v1990_v43  ;;  %p2423_p4 = pneg %p2422_p3  ;;  %s2426_s28 = scalar_lea.vmem %s2425_s25, 2048 }
  0x3b   : > { %v735_v30 = vpack.c.bf16 %v732_v24, %v731_v23  ;;  %v327_v31 = vpack.c.bf16 %v325_v26, %v324_v25  ;;  %v521_v54 = vunpack.c.l.bf16 %v519_v46  ;;  %v522_v55 = vunpack.c.h.bf16 %v519_v46  ;;  %p2427_p5 = scmp.lt.s32.totalorder %s2787_s10, %s2425_s25  ;;  %p2428_p6 = scmp.lt.s32.totalorder %s2426_s28, %s2420_s26 }
  0x3c   : > { %2116 = vmatprep.mubr.msk.bf16.mxu0 %vm344_vm0, %v326_v27  ;;  %v736_v32 = vpack.c.bf16 %v734_v29, %v733_v28  ;;  %v328_v33 = vunpack.c.l.bf16 %v326_v27  ;;  %v329_v34 = vunpack.c.h.bf16 %v326_v27  ;;  %v923_v56 = vunpack.c.l.bf16 %v921_v49 }
  0x3d   : > { %2152 = vmatprep.mubr.msk.bf16.mxu1 %vm344_vm0, %v735_v30  ;;  %2117 = vmatmul.mubr.msk.bf16.vlgmr.msra.gmra.mrb[0].mxu0 %vm344_vm0, %v327_v31  ;;  %v737_v35 = vunpack.c.l.bf16 %v735_v30  ;;  %v738_v36 = vunpack.c.h.bf16 %v735_v30  ;;  %v330_v50 = vunpack.c.l.bf16 %v327_v31  ;;  %v331_v51 = vunpack.c.h.bf16 %v327_v31  ;;  %p2429_p7 = por %p2428_p6, %p2427_p5 }
  0x3e   : > { %2153 = vmatmul.mubr.msk.bf16.vlgmr.msra.gmra.mrb[0].mxu1 %vm344_vm0, %v736_v32  ;;  %2121 = vmatpush3.bf16.msra.mxu0 %v2643_v0  ;;  %v332_v37 = vsub.f32 %v322_v19, %v328_v33  ;;  %v333_v38 = vsub.f32 %v323_v20, %v329_v34  ;;  %v739_v52 = vunpack.c.l.bf16 %v736_v32  ;;  %v740_v53 = vunpack.c.h.bf16 %v736_v32 }
  0x3f   : > { %2157 = vmatpush3.bf16.msra.mxu1 %v2643_v0  ;;  %2122 = vmatprep.mubr.msk.bf16.mxu0 %vm344_vm0, %v316_v4  ;;  %v741_v39 = vsub.f32 %v731_v23, %v737_v35  ;;  %v742_v40 = vsub.f32 %v732_v24, %v738_v36  ;;  %v924_v57 = vunpack.c.h.bf16 %v921_v49  ;;  %v334_v58 = vsub.f32 %v324_v25, %v330_v50  ;;  %p2430_p8 = pnand %p2429_p7, %p2423_p4 }
  0x40   : > { %2158 = vmatprep.mubr.msk.bf16.mxu1 %vm344_vm0, %v725_v8  ;;  %2126 = vmatprep.subr.bf16.mxu0 %v2643_v0  ;;  %v336_v45 = vpack.c.bf16 %v333_v38, %v332_v37  ;;  %v335_v59 = vsub.f32 %v325_v26, %v331_v51  ;;  %v743_v60 = vsub.f32 %v733_v28, %v739_v52 }
  0x41   : > { %2162 = vmatprep.subr.bf16.mxu1 %v2643_v0  ;;  %v745_v47 = vpack.c.bf16 %v742_v40, %v741_v39  ;;  %v744_v61 = vsub.f32 %v734_v29, %v740_v53  ;;  %v526_v1 = vsub.f32 %v1970_v42, %v522_v55  ;;  %v927_v4 = vsub.f32 %v1990_v43, %v923_v56  ;;  %v2717_v42 = vld [vmem:[%s2850_s3 + $0x10] sm:$0xff]   ;;  %v2722_v43 = vld [vmem:[%s2850_s3] sm:$0xff]  }
  0x42   : > { %v928_v5 = vsub.f32 %v1991_v44, %v924_v57  ;;  %v337_v6 = vpack.c.bf16 %v335_v59, %v334_v58  ;;  %v520_v7 = vpack.c.bf16 %v1972_v63, %v1971_v62 }
  0x43   : > { %v746_v8 = vpack.c.bf16 %v744_v61, %v743_v60 }
  0x44   : > { %v931_v11 = vpack.c.bf16 %v928_v5, %v927_v4  ;;  %v523_v12 = vunpack.c.l.bf16 %v520_v7  ;;  %v524_v13 = vunpack.c.h.bf16 %v520_v7 }
  0x46   : > { %v527_v16 = vsub.f32 %v1971_v62, %v523_v12  ;;  %v528_v17 = vsub.f32 %v1972_v63, %v524_v13  ;;  %v933_v24 = vunpack.c.l.bf16 %v931_v11  ;;  %v934_v25 = vunpack.c.h.bf16 %v931_v11  ;;  %v2414_v13 = vld [vmem:[%s2850_s3 + $0x18] sm:$0xff]  }
  0x48   : > { %v530_v20 = vpack.c.bf16 %v528_v17, %v527_v16  ;;  %v937_v28 = vsub.f32 %v927_v4, %v933_v24  ;;  %v938_v29 = vsub.f32 %v928_v5, %v934_v25 }
  0x49   : > { %2123 = vmatmul.mubr.msk.bf16.vlgmr.msra.gmra.mrb[0].mxu0 %vm344_vm0, %v317_v9  ;;  %v922_v9 = vpack.c.bf16 %v1993_v3, %v1992_v2 }
  0x4a   : > { %2159 = vmatmul.mubr.msk.bf16.vlgmr.msra.gmra.mrb[0].mxu1 %vm344_vm0, %v726_v14  ;;  %2127 = vmatpush3.bf16.msra.mxu0 %v2643_v0  ;;  %v941_v31 = vpack.c.bf16 %v938_v29, %v937_v28  ;;  %v533_v32 = vunpack.c.l.bf16 %v530_v20  ;;  %v534_v33 = vunpack.c.h.bf16 %v530_v20 }
  0x4b   : > { %2163 = vmatpush3.bf16.msra.mxu1 %v2643_v0  ;;  %2128 = vmatprep.mubr.msk.bf16.mxu0 %vm344_vm0, %v336_v45  ;;  %v525_v0 = vsub.f32 %v1969_v41, %v521_v54  ;;  %v925_v14 = vunpack.c.l.bf16 %v922_v9  ;;  %v926_v15 = vunpack.c.h.bf16 %v922_v9 }
  0x4c   : > { %2164 = vmatprep.mubr.msk.bf16.mxu1 %vm344_vm0, %v745_v47  ;;  %2132 = vmatprep.subr.bf16.mxu0 %v2676_v48  ;;  %v537_v36 = vsub.f32 %v527_v16, %v533_v32  ;;  %v538_v37 = vsub.f32 %v528_v17, %v534_v33  ;;  %v2415_v17 = vld [vmem:[%s2850_s3 + $0x8] sm:$0xff]  }
  0x4d   : > { %2168 = vmatprep.subr.bf16.mxu1 %v2676_v48  ;;  %v529_v10 = vpack.c.bf16 %v526_v1, %v525_v0  ;;  %v929_v18 = vsub.f32 %v1992_v2, %v925_v14  ;;  %v930_v19 = vsub.f32 %v1993_v3, %v926_v15 }
  0x4e   : > { %v540_v40 = vpack.c.bf16 %v538_v37, %v537_v36  ;;  %v2418_v36 = vld [vmem:[%s2851_s4 + $0x18] sm:$0xff]   ;;  %v2419_v37 = vld [vmem:[%s2851_s4 + $0x8] sm:$0xff]  }
  0x4f   : > { %v932_v21 = vpack.c.bf16 %v930_v19, %v929_v18  ;;  %v531_v22 = vunpack.c.l.bf16 %v529_v10  ;;  %v532_v23 = vunpack.c.h.bf16 %v529_v10 }
  0x51   : > { %v535_v26 = vsub.f32 %v525_v0, %v531_v22  ;;  %v536_v27 = vsub.f32 %v526_v1, %v532_v23  ;;  %v935_v34 = vunpack.c.l.bf16 %v932_v21  ;;  %v936_v35 = vunpack.c.h.bf16 %v932_v21 }
  0x53   : > { %v539_v30 = vpack.c.bf16 %v536_v27, %v535_v26  ;;  %v939_v38 = vsub.f32 %v929_v18, %v935_v34  ;;  %v940_v39 = vsub.f32 %v930_v19, %v936_v35  ;;  %v2416_v34 = vld [vmem:[%s2851_s4 + $0x10] sm:$0xff]   ;;  %v2417_v35 = vld [vmem:[%s2851_s4] sm:$0xff]  }
  0x55   : > { %2129 = vmatmul.mubr.msk.bf16.vlgmr.msra.gmra.mrb[0].mxu0 %vm344_vm0, %v337_v6  ;;  %v942_v41 = vpack.c.bf16 %v940_v39, %v939_v38 }
  0x56   : > { %2165 = vmatmul.mubr.msk.bf16.vlgmr.msra.gmra.mrb[0].mxu1 %vm344_vm0, %v746_v8  ;;  %2133 = vmatpush3.bf16.msra.mxu0 %v2676_v48 }
  0x57   : > { %2169 = vmatpush3.bf16.msra.mxu1 %v2676_v48  ;;  %2134 = vmatprep.mubr.msk.bf16.mxu0 %vm344_vm0, %v529_v10 }
  0x58   : > { %2170 = vmatprep.mubr.msk.bf16.mxu1 %vm344_vm0, %v931_v11  ;;  %2138 = vmatprep.subr.bf16.mxu0 %v2676_v48 }
  0x59   : > { %2174 = vmatprep.subr.bf16.mxu1 %v2676_v48 }
  0x61   : > { %2135 = vmatmul.mubr.msk.bf16.vlgmr.msra.gmra.mrb[0].mxu0 %vm344_vm0, %v530_v20 }
  0x62   : > { %2171 = vmatmul.mubr.msk.bf16.vlgmr.msra.gmra.mrb[0].mxu1 %vm344_vm0, %v932_v21  ;;  %2139 = vmatpush3.bf16.msra.mxu0 %v2676_v48 }
  0x63   : > { %2175 = vmatpush3.bf16.msra.mxu1 %v2676_v48  ;;  %2140 = vmatprep.mubr.msk.bf16.mxu0 %vm344_vm0, %v519_v46 }
  0x64   : > { %2176 = vmatprep.mubr.msk.bf16.mxu1 %vm344_vm0, %v921_v49  ;;  %2144 = vmatprep.subr.bf16.mxu0 %v2676_v48 }
  0x65   : > { %2180 = vmatprep.subr.bf16.mxu1 %v2676_v48 }
  0x6d   : > { %2141 = vmatmul.mubr.msk.bf16.vlgmr.msra.gmra.mrb[0].mxu0 %vm344_vm0, %v520_v7 }
  0x6e   : > { %2177 = vmatmul.mubr.msk.bf16.vlgmr.msra.gmra.mrb[0].mxu1 %vm344_vm0, %v922_v9  ;;  %2145 = vmatpush3.bf16.msra.mxu0 %v2676_v48 }
  0x6f   : > { %2181 = vmatpush3.bf16.msra.mxu1 %v2676_v48  ;;  %2146 = vmatprep.mubr.msk.bf16.mxu0 %vm344_vm0, %v539_v30 }
  0x70   : > { %2182 = vmatprep.mubr.msk.bf16.mxu1 %vm344_vm0, %v941_v31 }
  0x79   : > { %2147 = vmatmul.mubr.msk.bf16.vlgmr.msra.gmra.mrb[0].mxu0 %vm344_vm0, %v540_v40 }
  0x7a   : > { %2183 = vmatmul.mubr.msk.bf16.vlgmr.msra.gmra.mrb[0].mxu1 %vm344_vm0, %v942_v41  ;;  %2188 = vmatprep.mubr.msk.bf16.mxu0 %vm344_vm0, %v2722_v43 }
  0x7b   : > { %2194 = vmatprep.mubr.msk.bf16.mxu1 %vm344_vm0, %v2717_v42 }
 0x14c   : > { %v2148_v44 = vpop.f32.mrb[0].mxu0 }
 0x14d   : > { %v2184_v45 = vpop.f32.mrb[0].mxu1  ;;  %v697_v46 = vpop.f32.mrb[1].mxu0 }
 0x14e   : > { %v1093_v47 = vpop.f32.mrb[1].mxu1  ;;  %v2149_v48 = vpop.f32.mrb[2].mxu0 }
 0x14f   : > { %v1117_v49 = vpack.c.bf16 %v2149_v48, %v2148_v44  ;;  %v2185_v50 = vpop.f32.mrb[2].mxu1  ;;  %v700_v51 = vpop.f32.mrb[3].mxu0 }
 0x150   : > { %v2728_v52 = vpack.c.bf16 %v2185_v50, %v2184_v45  ;;  %v1116_v53 = vpack.c.bf16 %v700_v51, %v697_v46  ;;  %v1096_v54 = vpop.f32.mrb[3].mxu1 }
 0x151   : > { %v1120_v55 = vunpack.c.l.bf16 %v1117_v49  ;;  %v1121_v56 = vunpack.c.h.bf16 %v1117_v49  ;;  %v2730_v57 = vpack.c.bf16 %v1096_v54, %v1093_v47 }
 0x152   : > { %v1476_v58 = vunpack.c.l.bf16 %v2728_v52  ;;  %v1477_v59 = vunpack.c.h.bf16 %v2728_v52  ;;  %v1118_v60 = vunpack.c.l.bf16 %v1116_v53  ;;  %v1119_v61 = vunpack.c.h.bf16 %v1116_v53 }
 0x153   : > { %v1124_v62 = vsub.f32 %v2148_v44, %v1120_v55  ;;  %v1125_v63 = vsub.f32 %v2149_v48, %v1121_v56  ;;  %v1474_v0 = vunpack.c.l.bf16 %v2730_v57  ;;  %v1475_v1 = vunpack.c.h.bf16 %v2730_v57 }
 0x154   : > { %v1480_v2 = vsub.f32 %v2184_v45, %v1476_v58  ;;  %v1481_v3 = vsub.f32 %v2185_v50, %v1477_v59  ;;  %v1122_v4 = vsub.f32 %v697_v46, %v1118_v60  ;;  %v1123_v5 = vsub.f32 %v700_v51, %v1119_v61 }
 0x155   : > { %v1127_v6 = vpack.c.bf16 %v1125_v63, %v1124_v62  ;;  %v1478_v7 = vsub.f32 %v1093_v47, %v1474_v0  ;;  %v1479_v8 = vsub.f32 %v1096_v54, %v1475_v1 }
 0x156   : > { %v1483_v9 = vpack.c.bf16 %v1481_v3, %v1480_v2  ;;  %v1126_v10 = vpack.c.bf16 %v1123_v5, %v1122_v4 }
 0x157   : > { %v1131_v11 = vunpack.c.h.bf16 %v1127_v6  ;;  %v1482_v12 = vpack.c.bf16 %v1479_v8, %v1478_v7  ;;  %2192 = vmatprep.subr.bf16.mxu1 %v1127_v6  ;;  %v1130_v14 = vunpack.c.l.bf16 %v1127_v6 }
 0x158   : > { %v1487_v15 = vunpack.c.h.bf16 %v1483_v9  ;;  %v1129_v16 = vunpack.c.h.bf16 %v1126_v10  ;;  %2186 = vmatprep.subr.bf16.mxu0 %v1126_v10  ;;  %2193 = vmatpush3.bf16.msra.mxu1 %v1127_v6  ;;  %v1128_v18 = vunpack.c.l.bf16 %v1126_v10  ;;  %v1486_v19 = vunpack.c.l.bf16 %v1483_v9 }
 0x159   : > { %v1135_v20 = vsub.f32 %v1125_v63, %v1131_v11  ;;  %v1485_v21 = vunpack.c.h.bf16 %v1482_v12  ;;  %2187 = vmatpush3.bf16.msra.mxu0 %v1126_v10  ;;  %2204 = vmatprep.subr.bf16.mxu1 %v1117_v49  ;;  %v1134_v22 = vsub.f32 %v1124_v62, %v1130_v14  ;;  %v1484_v23 = vunpack.c.l.bf16 %v1482_v12 }
 0x15a   : > { %v1491_v24 = vsub.f32 %v1481_v3, %v1487_v15  ;;  %v1133_v25 = vsub.f32 %v1123_v5, %v1129_v16  ;;  %2198 = vmatprep.subr.bf16.mxu0 %v1116_v53  ;;  %v1132_v26 = vsub.f32 %v1122_v4, %v1128_v18  ;;  %v1490_v27 = vsub.f32 %v1480_v2, %v1486_v19 }
 0x15b   : > { %v1489_v28 = vsub.f32 %v1479_v8, %v1485_v21  ;;  %2195 = vmatmul.mubr.msk.bf16.vlgmr.msra.gmra.mrb[4].mxu1 %vm344_vm0, %v2414_v13  ;;  %v1137_v29 = vpack.c.bf16 %v1135_v20, %v1134_v22  ;;  %v1488_v30 = vsub.f32 %v1478_v7, %v1484_v23 }
 0x15c   : > { %2189 = vmatmul.mubr.msk.bf16.vlgmr.msra.gmra.mrb[4].mxu0 %vm344_vm0, %v2415_v17  ;;  %2205 = vmatpush3.bf16.msra.mxu1 %v1117_v49  ;;  %v1136_v31 = vpack.c.bf16 %v1133_v25, %v1132_v26  ;;  %v1493_v32 = vpack.c.bf16 %v1491_v24, %v1490_v27 }
 0x15d   : > { %2199 = vmatpush3.bf16.msra.mxu0 %v1116_v53  ;;  %2216 = vmatprep.subr.bf16.mxu1 %v1137_v29  ;;  %v1492_v33 = vpack.c.bf16 %v1489_v28, %v1488_v30 }
 0x15e   : > { %2210 = vmatprep.subr.bf16.mxu0 %v1136_v31  ;;  %2206 = vmatprep.mubr.msk.bf16.mxu1 %vm344_vm0, %v2717_v42 }
 0x15f   : > { %2200 = vmatprep.mubr.msk.bf16.mxu0 %vm344_vm0, %v2722_v43 }
 0x167   : > { %2207 = vmatmul.mubr.msk.bf16.vlgmr.msra.gmra.mrb[4].mxu1 %vm344_vm0, %v2414_v13 }
 0x168   : > { %2217 = vmatpush3.bf16.msra.mxu1 %v1137_v29  ;;  %2201 = vmatmul.mubr.msk.bf16.vlgmr.msra.gmra.mrb[4].mxu0 %vm344_vm0, %v2415_v17 }
 0x169   : > { %2211 = vmatpush3.bf16.msra.mxu0 %v1136_v31  ;;  %2228 = vmatprep.subr.bf16.mxu1 %v1483_v9 }
 0x16a   : > { %2222 = vmatprep.subr.bf16.mxu0 %v1482_v12  ;;  %2218 = vmatprep.mubr.msk.bf16.mxu1 %vm344_vm0, %v2717_v42 }
 0x16b   : > { %2212 = vmatprep.mubr.msk.bf16.mxu0 %vm344_vm0, %v2722_v43 }
 0x173   : > { %2219 = vmatmul.mubr.msk.bf16.vlgmr.msra.gmra.mrb[4].mxu1 %vm344_vm0, %v2414_v13 }
 0x174   : > { %2229 = vmatpush3.bf16.msra.mxu1 %v1483_v9  ;;  %2213 = vmatmul.mubr.msk.bf16.vlgmr.msra.gmra.mrb[4].mxu0 %vm344_vm0, %v2415_v17 }
 0x175   : > { %2223 = vmatpush3.bf16.msra.mxu0 %v1482_v12  ;;  %2240 = vmatprep.subr.bf16.mxu1 %v2728_v52 }
 0x176   : > { %2234 = vmatprep.subr.bf16.mxu0 %v2730_v57  ;;  %2230 = vmatprep.mubr.msk.bf16.mxu1 %vm344_vm0, %v2416_v34 }
 0x177   : > { %2224 = vmatprep.mubr.msk.bf16.mxu0 %vm344_vm0, %v2417_v35 }
 0x17f   : > { %2231 = vmatmul.mubr.msk.bf16.vlgmr.msra.gmra.mrb[4].mxu1 %vm344_vm0, %v2418_v36 }
 0x180   : > { %2241 = vmatpush3.bf16.msra.mxu1 %v2728_v52  ;;  %2225 = vmatmul.mubr.msk.bf16.vlgmr.msra.gmra.mrb[4].mxu0 %vm344_vm0, %v2419_v37 }
 0x181   : > { %2235 = vmatpush3.bf16.msra.mxu0 %v2730_v57  ;;  %2252 = vmatprep.subr.bf16.mxu1 %v1493_v32 }
 0x182   : > { %2246 = vmatprep.subr.bf16.mxu0 %v1492_v33  ;;  %2242 = vmatprep.mubr.msk.bf16.mxu1 %vm344_vm0, %v2416_v34 }
 0x183   : > { %2236 = vmatprep.mubr.msk.bf16.mxu0 %vm344_vm0, %v2417_v35 }
 0x18b   : > { %2243 = vmatmul.mubr.msk.bf16.vlgmr.msra.gmra.mrb[4].mxu1 %vm344_vm0, %v2418_v36 }
 0x18c   : > { %2253 = vmatpush3.bf16.msra.mxu1 %v1493_v32  ;;  %2237 = vmatmul.mubr.msk.bf16.vlgmr.msra.gmra.mrb[4].mxu0 %vm344_vm0, %v2419_v37 }
 0x18d   : > { %2247 = vmatpush3.bf16.msra.mxu0 %v1492_v33  ;;  %2254 = vmatprep.mubr.msk.bf16.mxu1 %vm344_vm0, %v2416_v34 }
 0x18e   : > { %2248 = vmatprep.mubr.msk.bf16.mxu0 %vm344_vm0, %v2417_v35 }
 0x197   : > { %2255 = vmatmul.mubr.msk.bf16.vlgmr.msra.gmra.mrb[4].mxu1 %vm344_vm0, %v2418_v36 }
 0x198   : > { %2249 = vmatmul.mubr.msk.bf16.vlgmr.msra.gmra.mrb[4].mxu0 %vm344_vm0, %v2419_v37 }
 0x26a   : > { %v2256_v38 = vpop.f32.mrb[4].mxu1 }
 0x26b   : > { %1843 = vst.msk [vmem:[%s286_s29 + $0x30] sm:$0xff] %vm1836_vm1, %v2256_v38  ;;  %v2250_v39 = vpop.f32.mrb[4].mxu0  ;;  %v1805_v40 = vpop.f32.mrb[5].mxu1 }
 0x26c   : > { %1839 = vst.msk [vmem:[%s286_s29 + $0x10] sm:$0xff] %vm1836_vm1, %v2250_v39  ;;  %1841 = vst.msk [vmem:[%s286_s29 + $0x20] sm:$0xff] %vm1836_vm1, %v1805_v40  ;;  %v1756_v41 = vpop.f32.mrb[5].mxu0  ;;  %v2257_v42 = vpop.f32.mrb[6].mxu1 }
 0x26d   : > { %1837 = vst.msk [vmem:[%s286_s29] sm:$0xff] %vm1836_vm1, %v1756_v41  ;;  %1844 = vst.msk [vmem:[%s286_s29 + $0x38] sm:$0xff] %vm1836_vm1, %v2257_v42  ;;  %v2251_v43 = vpop.f32.mrb[6].mxu0  ;;  %v1808_v44 = vpop.f32.mrb[7].mxu1 }
 0x26e   : > { %1840 = vst.msk [vmem:[%s286_s29 + $0x18] sm:$0xff] %vm1836_vm1, %v2251_v43  ;;  %1842 = vst.msk [vmem:[%s286_s29 + $0x28] sm:$0xff] %vm1836_vm1, %v1808_v44  ;;  %v1759_v45 = vpop.f32.mrb[7].mxu0 }
 0x26f   : > { %1838 = vst.msk [vmem:[%s286_s29 + $0x8] sm:$0xff] %vm1836_vm1, %v1759_v45 }
 0x270   : > { %2433 = shalt.err (!%p2430_p8)
}
 0x271   : > { %s2434_s9 = scalar_lea.hbm %s2794_s21, 1024  ;;  %s2438_s17 = scalar_lea.hbm %s2852_s5, 4096 }
 0x272   : > { %p2435_p10 = scmp.ne.s32.totalorder %s2794_s21, %s2434_s9  ;;  %p2439_p0 = scmp.lt.u32.totalorder %s2794_s21, %s2852_s5 }
 0x273   : > { %p2440_p1 = scmp.lt.u32.totalorder %s2438_s17, %s2434_s9  ;;  %p2442_p3 = scmp.lt.u32.totalorder %s2434_s9, %s2794_s21 }
 0x274   : > { %p2436_p12 = pnand %p2435_p10, %p2594_p9 }
 0x275   : > { %p2441_p2 = por %p2440_p1, %p2439_p0 }
 0x276   : > { %p2437_p13 = pneg %p2436_p12 }
 0x277   : > { %p2443_p4 = por %p2442_p3, %p2441_p2 }
 0x279   : > { %p2444_p5 = pnand %p2443_p4, %p2437_p13 }
 0x27b   : > { %2447 = shalt.err (!%p2444_p5)
}
 0x27c   : > { %s2511_s11 = smov 128   ;;  %s2512_s12 = smov 8  }
 0x27d   : > { %2347 = dma.vmem_to_hbm [thread:$0]  (%p2594_p9), %s2787_s10, 1024, %s2794_s21, %s1846_s15, %s2511_s11, %s2511_s11, %s2512_s12  }
 0x27e PF: > { %p2353_p6 = scmp.ge.s32.totalorder %s2502_s23, 2  ;;  %s1877_s13 = sand.u32 1, %s2482_s18  }
 0x27f   : > { %s1878_s26 = scalar_lea.sflag [#allocation4], %s1877_s13 }
 0x280   : > { %p2350_p7 = pnand %p2353_p6, %p2601_p11 }
 0x282   : > { %2477 = dma.done.wait (!%p2350_p7), %s1878_s26, 1024  }
 0x283   : > { %2479 = vsyncadd (!%p2350_p7), %s1878_s26, 4294966272  ;;  %s21_s23 = sadd.s32 1, %s2502_s23   ;;  %s2859_s6 = sld [smem:[#allocation11_spill]] }
 0x284   : > { %p18_p8 = scmp.ge.s32.totalorder %s21_s23, 6   ;;  %s2860_s18 = smov %s2486_s19 }
 0x285   : > { %s2861_s19 = smov %s2490_s20  ;;  %s2862_s20 = smov %s2599_s7 }
 0x286   : > { %s2863_s21 = smov %s2498_s22  ;;  %20 = sbr.rel (!%p18_p8) target bundleno = 6 (0x6), region = 93 }
 0x289   : > { %s2864_s22 = smov %s2859_s6 }
 0x28d   :  { %1883 = vsyncpa [#allocation3], 1 }
 0x28e   :  { %1885 = vsyncpa [#allocation3 + $0x1], 1 }
 0x28f   :  { %1886 = vsyncpa [#allocation4], 1 }
 0x290   :  { %1888 = vsyncpa [#allocation4 + $0x1], 1 }

</bundles_post_ra>
